<compile_context>
chip_gen: v7x
topology: tpu7x:2x2x1
jax: 0.10.0
libtpu: 0.0.40
codegen_flags: <defaults>
</compile_context>

<pallas_src>
import functools

import jax
import jax.numpy as jnp
from jax.experimental import pallas as pl
from jax.experimental.pallas import tpu as pltpu


def _gcn_kernel(x_ref, adj_ref, w_ref, p_ref, msg_ref, enc_ref, enc_fold_ref,
                *, tb, n_nodes, tile_n, hidden, eps):
    """One grid step: (batch-tile bt [slow axis], node-tile nt [fast axis])."""
    nt = pl.program_id(1)

    # ---- Encode once per batch tile (nt == 0): X@W + b -> LN -> ReLU, then
    #      fold batch into lanes so every message matmul sees tb*H columns.
    @pl.when(nt == 0)
    def _encode():
        x = x_ref[...]                                   # (tb, N, F_in)
        f_in = x.shape[-1]
        h = jnp.dot(x.reshape(tb * n_nodes, f_in), w_ref[...],
                    preferred_element_type=jnp.float32)  # (tb*N, H)
        p = p_ref[...]                                   # (3, H): bias/gamma/beta
        h = h + p[0:1, :]
        mean = jnp.mean(h, axis=-1, keepdims=True)
        cen = h - mean
        var = jnp.mean(cen * cen, axis=-1, keepdims=True)
        h = cen * jax.lax.rsqrt(var + eps)
        h = h * p[1:2, :] + p[2:3, :]
        h = jnp.maximum(h, jnp.float32(0.0))
        if tb == 1:
            folded = h                                   # (N, H)
        else:
            # (tb*N, H) -> (N, tb*H): static row slices + lane concatenation.
            folded = jnp.concatenate(
                [h[b * n_nodes:(b + 1) * n_nodes, :] for b in range(tb)],
                axis=-1)
        enc_fold_ref[...] = folded

    # ---- Message passing for this adjacency row tile: one wide MXU matmul.
    adj_tile = adj_ref[...]                              # (tile_n, N)
    enc_fold = enc_fold_ref[...]                         # (N, tb*H)
    msg = jnp.dot(adj_tile, enc_fold, preferred_element_type=jnp.float32)
    msg_ref[0] = msg.astype(msg_ref.dtype)

    # Lane-dense enc output: node-tile slice of the folded scratch.
    start = pl.multiple_of(nt * tile_n, tile_n)
    enc_ref[0] = enc_fold_ref[pl.ds(start, tile_n), :].astype(enc_ref.dtype)


def gcn_forward(features, adj, weight, bias, gamma, beta, *,
                eps=1e-5, batch_tile=None, node_tile=None):
    """features: [..., N, F_in]; adj: [N, N]; weight: [F_in, H] (== torch W.T).

    Returns [..., N, 2*H] = concat([adj @ enc, enc], -1) with
    enc = relu(layernorm(features @ weight + bias)).
    """
    lead_shape = features.shape[:-2]
    n_nodes, f_in = features.shape[-2:]
    hidden = weight.shape[1]

    feats = features.reshape((-1, n_nodes, f_in))
    batch = feats.shape[0]

    # --- Per-generation VMEM budget: 75% of the physical per-core VMEM
    #     (48 MiB on v7x, ~96 MiB on v5e/v6e).
    try:
        vmem_cap = pltpu.get_tpu_info().vmem_capacity_bytes
    except Exception:                                    # pragma: no cover
        vmem_cap = 64 << 20
    vmem_budget = int(vmem_cap * 3 // 4)

    # --- Batch tile: target wide MXU columns (tb*H >= 256) and a few hundred
    #     encode rows, but keep >= 2 batch tiles when batch >= 2 so the
    #     "parallel" axis can be sharded across both v7x TensorCores.
    if batch_tile is None:
        tb = max(-(-256 // hidden), -(-512 // n_nodes))
        tb = min(tb, 32)
    else:
        tb = batch_tile
    tb = max(1, min(tb, batch))
    if batch >= 2:
        tb = min(tb, -(-batch // 2))

    # --- Node (adjacency-row) tile: full N for small graphs, otherwise the
    #     largest multiple-of-8 divisor of N under a per-generation cap.
    if node_tile is None:
        max_tile = 1024 if vmem_budget >= (72 << 20) else 512
        if n_nodes <= max_tile:
            node_tile = n_nodes
        else:
            node_tile = n_nodes          # last resort: untiled adjacency rows
            for cand in range(max_tile, 7, -8):
                if n_nodes % cand == 0:
                    node_tile = cand
                    break
    tile_n = node_tile
    if n_nodes % tile_n != 0 or (tile_n != n_nodes and tile_n % 8 != 0):
        tile_n = n_nodes

    # --- Pad batch to a multiple of tb (padded rows are discarded afterwards).
    batch_pad = -(-batch // tb) * tb
    if batch_pad != batch:
        feats = jnp.pad(feats, ((0, batch_pad - batch), (0, 0), (0, 0)))

    num_batch_tiles = batch_pad // tb
    num_node_tiles = n_nodes // tile_n
    grid = (num_batch_tiles, num_node_tiles)             # batch slow, node fast

    # --- VMEM accounting: double-buffered blocks + persistent scratch.
    itemsize = 4
    blk_x = tb * n_nodes * f_in * itemsize
    blk_adj = tile_n * n_nodes * itemsize
    blk_out = tile_n * tb * hidden * itemsize
    blk_w = f_in * hidden * itemsize
    blk_p = 3 * hidden * itemsize
    scratch_bytes = n_nodes * tb * hidden * itemsize
    need = 2 * (blk_x + blk_adj + 2 * blk_out + blk_w + blk_p) + scratch_bytes
    vmem_limit = int(min(max(need + need // 2, 32 << 20), vmem_budget))

    # Pack LayerNorm/bias vectors into one (3, H) block: a single small DMA.
    params = jnp.stack([bias, gamma, beta], axis=0)

    kernel = functools.partial(_gcn_kernel, tb=tb, n_nodes=n_nodes,
                               tile_n=tile_n, hidden=hidden, eps=eps)

    msg_fold, enc_fold = pl.pallas_call(
        kernel,
        out_shape=(
            jax.ShapeDtypeStruct((num_batch_tiles, n_nodes, tb * hidden),
                                 features.dtype),
            jax.ShapeDtypeStruct((num_batch_tiles, n_nodes, tb * hidden),
                                 features.dtype),
        ),
        grid_spec=pltpu.PrefetchScalarGridSpec(
            num_scalar_prefetch=0,
            grid=grid,
            in_specs=[
                pl.BlockSpec((tb, n_nodes, f_in), lambda bt, nt: (bt, 0, 0)),
                pl.BlockSpec((tile_n, n_nodes), lambda bt, nt: (nt, 0)),
                pl.BlockSpec((f_in, hidden), lambda bt, nt: (0, 0)),
                pl.BlockSpec((3, hidden), lambda bt, nt: (0, 0)),
            ],
            out_specs=(
                pl.BlockSpec((1, tile_n, tb * hidden),
                             lambda bt, nt: (bt, nt, 0)),
                pl.BlockSpec((1, tile_n, tb * hidden),
                             lambda bt, nt: (bt, nt, 0)),
            ),
            scratch_shapes=[pltpu.VMEM((n_nodes, tb * hidden), jnp.float32)],
        ),
        compiler_params=pltpu.CompilerParams(
            dimension_semantics=("parallel", "arbitrary"),
            vmem_limit_bytes=vmem_limit),
    )(feats, adj, weight, params)

    def _unfold(arr):
        # (NBT, N, tb*H) -> (batch, N, H); column index is b*H + h.
        a = arr.reshape(num_batch_tiles, n_nodes, tb, hidden)
        a = jnp.transpose(a, (0, 2, 1, 3))
        return a.reshape(batch_pad, n_nodes, hidden)[:batch]

    out = jnp.concatenate([_unfold(msg_fold), _unfold(enc_fold)], axis=-1)
    return out.reshape((*lead_shape, n_nodes, 2 * hidden))


def _reference(features, adj, weight, bias, gamma, beta, eps=1e-5):
    enc = features @ weight + bias
    mean = jnp.mean(enc, axis=-1, keepdims=True)
    var = jnp.mean((enc - mean) ** 2, axis=-1, keepdims=True)
    enc = (enc - mean) / jnp.sqrt(var + eps) * gamma + beta
    enc = jnp.maximum(enc, 0.0)
    msg = jnp.einsum("ij,...jk->...ik", adj, enc)
    return jnp.concatenate([msg, enc], axis=-1)


if __name__ == "__main__":
    # Small, module-consistent shapes: batch=2, nodes=16, in_features=8, hidden=32.
    B, N, F_IN, HIDDEN = 2, 16, 8, 32

    key = jax.random.PRNGKey(0)
    k_feat, k_adj, k_w, k_b = jax.random.split(key, 4)

    features = jax.random.normal(k_feat, (B, N, F_IN), dtype=jnp.float32)
    adj = (jax.random.uniform(k_adj, (N, N), dtype=jnp.float32) > 0.7
           ).astype(jnp.float32)

    # nn.Linear-style params (torch W is (H, F_in); stored here transposed).
    bound = 1.0 / jnp.sqrt(jnp.float32(F_IN))
    weight = jax.random.uniform(k_w, (F_IN, HIDDEN), dtype=jnp.float32,
                                minval=-bound, maxval=bound)
    bias = jax.random.uniform(k_b, (HIDDEN,), dtype=jnp.float32,
                              minval=-bound, maxval=bound)
    gamma = jnp.ones((HIDDEN,), dtype=jnp.float32)   # LayerNorm weight
    beta = jnp.zeros((HIDDEN,), dtype=jnp.float32)   # LayerNorm bias

    out = gcn_forward(features, adj, weight, bias, gamma, beta)
    out = jax.block_until_ready(out)

    ref = _reference(features, adj, weight, bias, gamma, beta)
    assert out.shape == (B, N, 2 * HIDDEN)
    assert jnp.allclose(out, ref, atol=1e-4, rtol=1e-4)

    print("KERNEL_OK")
</pallas_src>

<mosaic_0001>
module attributes {stable_mosaic.version = 11 : i64} {
  func.func @_gcn_kernel(%arg0: i32, %arg1: i32, %arg2: memref<1x16x8xf32, #tpu.memory_space<vmem>>, %arg3: memref<16x16xf32, #tpu.memory_space<vmem>>, %arg4: memref<8x32xf32, #tpu.memory_space<vmem>>, %arg5: memref<3x32xf32, #tpu.memory_space<vmem>>, %arg6: memref<1x16x32xf32, #tpu.memory_space<vmem>>, %arg7: memref<1x16x32xf32, #tpu.memory_space<vmem>>, %arg8: memref<16x32xf32, #tpu.memory_space<vmem>>) attributes {dimension_semantics = [#tpu.dimension_semantics<parallel>, #tpu.dimension_semantics<arbitrary>], iteration_bounds = array<i64: 2, 1>, scalar_prefetch = 0 : i64, scratch_operands = 1 : i64, tpu.core_type = #tpu.core_type<tc>, window_params = [{transform_indices = @transform_0, window_bounds = array<i64: 1, 16, 8>}, {transform_indices = @transform_1, window_bounds = array<i64: 16, 16>}, {pipeline_mode = #tpu.pipeline_mode<synchronous>, transform_indices = @transform_2, window_bounds = array<i64: 8, 32>}, {pipeline_mode = #tpu.pipeline_mode<synchronous>, transform_indices = @transform_3, window_bounds = array<i64: 3, 32>}, {transform_indices = @transform_4, window_bounds = array<i64: 1, 16, 32>}, {transform_indices = @transform_5, window_bounds = array<i64: 1, 16, 32>}]} {
    %c0_i32 = arith.constant 0 : i32
    %0 = arith.cmpi eq, %arg1, %c0_i32 : i32
    %1 = arith.extui %0 : i1 to i32
    %c0_i32_0 = arith.constant 0 : i32
    %2 = arith.cmpi ne, %1, %c0_i32_0 : i32
    scf.if %2 {
      %c0_11 = arith.constant 0 : index
      %c0_12 = arith.constant 0 : index
      %c0_13 = arith.constant 0 : index
      %16 = vector.load %arg2[%c0_11, %c0_12, %c0_13] : memref<1x16x8xf32, #tpu.memory_space<vmem>>, vector<1x16x8xf32>
      %17 = vector.shape_cast %16 : vector<1x16x8xf32> to vector<16x8xf32>
      %c0_14 = arith.constant 0 : index
      %c0_15 = arith.constant 0 : index
      %18 = vector.load %arg4[%c0_14, %c0_15] : memref<8x32xf32, #tpu.memory_space<vmem>>, vector<8x32xf32>
      %cst_16 = arith.constant dense<0.000000e+00> : vector<16x32xf32>
      %19 = tpu.matmul %17, %18, %cst_16 {dimension_numbers = #tpu.dot_dimension_numbers<[1], [0], [0], [1], [0, 0, 1, 1], [], []>} : vector<16x8xf32>, vector<8x32xf32>, vector<16x32xf32> -> vector<16x32xf32>
      %c0_17 = arith.constant 0 : index
      %c0_18 = arith.constant 0 : index
      %20 = vector.load %arg5[%c0_17, %c0_18] : memref<3x32xf32, #tpu.memory_space<vmem>>, vector<3x32xf32>
      %21 = vector.extract_strided_slice %20 {offsets = [0, 0], sizes = [1, 32], strides = [1, 1]} : vector<3x32xf32> to vector<1x32xf32>
      %22 = vector.broadcast %21 : vector<1x32xf32> to vector<16x32xf32>
      %23 = arith.addf %19, %22 : vector<16x32xf32>
      %cst_19 = arith.constant dense<0.000000e+00> : vector<16xf32>
      %24 = vector.multi_reduction <add>, %23, %cst_19 [1] : vector<16x32xf32> to vector<16xf32>
      %25 = vector.shape_cast %24 : vector<16xf32> to vector<16x1xf32>
      %cst_20 = arith.constant 3.200000e+01 : f32
      %26 = vector.broadcast %cst_20 : f32 to vector<16x1xf32>
      %27 = arith.divf %25, %26 : vector<16x1xf32>
      %28 = vector.broadcast %27 : vector<16x1xf32> to vector<16x32xf32>
      %29 = arith.subf %23, %28 : vector<16x32xf32>
      %30 = arith.mulf %29, %29 : vector<16x32xf32>
      %cst_21 = arith.constant dense<0.000000e+00> : vector<16xf32>
      %31 = vector.multi_reduction <add>, %30, %cst_21 [1] : vector<16x32xf32> to vector<16xf32>
      %32 = vector.shape_cast %31 : vector<16xf32> to vector<16x1xf32>
      %cst_22 = arith.constant 3.200000e+01 : f32
      %33 = vector.broadcast %cst_22 : f32 to vector<16x1xf32>
      %34 = arith.divf %32, %33 : vector<16x1xf32>
      %cst_23 = arith.constant 9.99999974E-6 : f32
      %35 = vector.broadcast %cst_23 : f32 to vector<16x1xf32>
      %36 = arith.addf %34, %35 : vector<16x1xf32>
      %37 = math.rsqrt %36 : vector<16x1xf32>
      %38 = vector.broadcast %37 : vector<16x1xf32> to vector<16x32xf32>
      %39 = arith.mulf %29, %38 : vector<16x32xf32>
      %40 = vector.extract_strided_slice %20 {offsets = [1, 0], sizes = [1, 32], strides = [1, 1]} : vector<3x32xf32> to vector<1x32xf32>
      %41 = vector.broadcast %40 : vector<1x32xf32> to vector<16x32xf32>
      %42 = arith.mulf %39, %41 : vector<16x32xf32>
      %43 = vector.extract_strided_slice %20 {offsets = [2, 0], sizes = [1, 32], strides = [1, 1]} : vector<3x32xf32> to vector<1x32xf32>
      %44 = vector.broadcast %43 : vector<1x32xf32> to vector<16x32xf32>
      %45 = arith.addf %42, %44 : vector<16x32xf32>
      %cst_24 = arith.constant 0.000000e+00 : f32
      %46 = vector.broadcast %cst_24 : f32 to vector<16x32xf32>
      %47 = arith.maximumf %45, %46 : vector<16x32xf32>
      %c0_25 = arith.constant 0 : index
      %c0_26 = arith.constant 0 : index
      %48 = vector.load %arg8[%c0_25, %c0_26] : memref<16x32xf32, #tpu.memory_space<vmem>>, vector<16x32xf32>
      tpu.vector_store %arg8[%c0_25, %c0_26], %47 {strides = array<i32>} : memref<16x32xf32, #tpu.memory_space<vmem>>, vector<16x32xf32>,
    } else {
    }
    %c0 = arith.constant 0 : index
    %c0_1 = arith.constant 0 : index
    %3 = vector.load %arg3[%c0, %c0_1] : memref<16x16xf32, #tpu.memory_space<vmem>>, vector<16x16xf32>
    %c0_2 = arith.constant 0 : index
    %c0_3 = arith.constant 0 : index
    %4 = vector.load %arg8[%c0_2, %c0_3] : memref<16x32xf32, #tpu.memory_space<vmem>>, vector<16x32xf32>
    %cst = arith.constant dense<0.000000e+00> : vector<16x32xf32>
    %5 = tpu.matmul %3, %4, %cst {dimension_numbers = #tpu.dot_dimension_numbers<[1], [0], [0], [1], [0, 0, 1, 1], [], []>} : vector<16x16xf32>, vector<16x32xf32>, vector<16x32xf32> -> vector<16x32xf32>
    %c0_4 = arith.constant 0 : index
    %c0_5 = arith.constant 0 : index
    %c0_6 = arith.constant 0 : index
    %6 = vector.load %arg6[%c0_4, %c0_5, %c0_6] : memref<1x16x32xf32, #tpu.memory_space<vmem>>, vector<1x16x32xf32>
    %7 = vector.shape_cast %6 : vector<1x16x32xf32> to vector<16x32xf32>
    %8 = vector.shape_cast %5 : vector<16x32xf32> to vector<1x16x32xf32>
    tpu.vector_store %arg6[%c0_4, %c0_5, %c0_6], %8 {strides = array<i32>} : memref<1x16x32xf32, #tpu.memory_space<vmem>>, vector<1x16x32xf32>,
    %c16_i32 = arith.constant 16 : i32
    %9 = arith.muli %arg1, %c16_i32 : i32
    %10 = tpu.assume_multiple %9, 16 : i32
    %11 = arith.index_cast %10 : i32 to index
    %c0_7 = arith.constant 0 : index
    %12 = vector.load %arg8[%11, %c0_7] : memref<16x32xf32, #tpu.memory_space<vmem>>, vector<16x32xf32>
    %c0_8 = arith.constant 0 : index
    %c0_9 = arith.constant 0 : index
    %c0_10 = arith.constant 0 : index
    %13 = vector.load %arg7[%c0_8, %c0_9, %c0_10] : memref<1x16x32xf32, #tpu.memory_space<vmem>>, vector<1x16x32xf32>
    %14 = vector.shape_cast %13 : vector<1x16x32xf32> to vector<16x32xf32>
    %15 = vector.shape_cast %12 : vector<16x32xf32> to vector<1x16x32xf32>
    tpu.vector_store %arg7[%c0_8, %c0_9, %c0_10], %15 {strides = array<i32>} : memref<1x16x32xf32, #tpu.memory_space<vmem>>, vector<1x16x32xf32>,
    return
  }
  func.func @transform_0(%arg0: i32, %arg1: i32) -> (i32, i32, i32) {
    %c0_i32 = arith.constant 0 : i32
    %c0_i32_0 = arith.constant 0 : i32
    %c0_i32_1 = arith.constant 0 : i32
    return %arg0, %c0_i32, %c0_i32_0 : i32, i32, i32
  }
  func.func @transform_1(%arg0: i32, %arg1: i32) -> (i32, i32) {
    %c0_i32 = arith.constant 0 : i32
    %c0_i32_0 = arith.constant 0 : i32
    return %arg1, %c0_i32 : i32, i32
  }
  func.func @transform_2(%arg0: i32, %arg1: i32) -> (i32, i32) {
    %c0_i32 = arith.constant 0 : i32
    %c0_i32_0 = arith.constant 0 : i32
    %c0_i32_1 = arith.constant 0 : i32
    return %c0_i32, %c0_i32_0 : i32, i32
  }
  func.func @transform_3(%arg0: i32, %arg1: i32) -> (i32, i32) {
    %c0_i32 = arith.constant 0 : i32
    %c0_i32_0 = arith.constant 0 : i32
    %c0_i32_1 = arith.constant 0 : i32
    return %c0_i32, %c0_i32_0 : i32, i32
  }
  func.func @transform_4(%arg0: i32, %arg1: i32) -> (i32, i32, i32) {
    %c0_i32 = arith.constant 0 : i32
    %c0_i32_0 = arith.constant 0 : i32
    return %arg0, %arg1, %c0_i32 : i32, i32, i32
  }
  func.func @transform_5(%arg0: i32, %arg1: i32) -> (i32, i32, i32) {
    %c0_i32 = arith.constant 0 : i32
    %c0_i32_0 = arith.constant 0 : i32
    return %arg0, %arg1, %c0_i32 : i32, i32, i32
  }
}

</mosaic_0001>

<bundles_post_ra>
// kernel: tpu_custom_call.1
= control target key start
LH: loop header
LB: loop body
LE: loop exit
PB: predicated region body
PF: predicated region fallthrough
CT: control target
= control target key end

     0   :  { %11 = vsyncpa [#allocation4], 0  ;;  %s1118_s0 = inlined_call_operand.vmem [shape: f32[2,16,8], index: 0, kind: input, shape index: {}]   ;;  %s1119_s1 = inlined_call_operand.vmem [shape: f32[16,16], index: 1, kind: input, shape index: {}]   ;;  %s1120_s2 = inlined_call_operand.vmem [shape: f32[8,32], index: 2, kind: input, shape index: {}]   ;;  %s1121_s3 = inlined_call_operand.vmem [shape: f32[3,32], index: 3, kind: input, shape index: {}]   ;;  %s1122_s4 = inlined_call_operand.hbm [shape: f32[2,16,32], index: 4, kind: output, shape index: {0}]   ;;  %s1123_s5 = inlined_call_operand.hbm [shape: f32[2,16,32], index: 5, kind: output, shape index: {1}]  }
   0x1   :  { %13 = vsyncpa [#allocation4 + $0x1], 0 }
   0x2   :  { %14 = vsyncpa [#allocation6], 0 }
   0x3   :  { %16 = vsyncpa [#allocation6 + $0x1], 0  ;;  %s931_s18 = smov 0   ;;  %s933_s19 = smov 0  }
   0x4   :  { %s935_s20 = smov 0   ;;  %s937_s21 = smov 0  }
   0x5   :  { %s939_s22 = smov 0   ;;  %s941_s23 = smov 0  }
   0x6 LB: > { %s671_s24 = sadd.s32 4294967295, %s895_s23   ;;  %s672_s25 = sadd.s32 4294967294, %s895_s23   ;;  %s895_s23 = sphi %s941_s23, %s22_s23   ;;  %s891_s22 = sphi %s939_s22, %s1130_s22   ;;  %s887_s21 = sphi %s937_s21, %s1129_s21   ;;  %s883_s20 = sphi %s935_s20, %s1128_s20   ;;  %s879_s19 = sphi %s933_s19, %s1127_s19   ;;  %s875_s18 = sphi %s931_s18, %s1126_s18  }
   0x7   : > { %s34_s26 = sadd.s32 1, %s891_s22  ;;  %s137_s27 = sadd.s32 1, %s883_s20 }
   0x8   : > { %p36_p0 = scmp.ge.s32.totalorder %s34_s26, 2  ;;  %p147_p1 = scmp.ne.s32.totalorder %s883_s20, %s879_s19 }
   0x9   : > { %p148_p2 = scmp.eq.s32.totalorder %s671_s24, 1  ;;  %p153_p3 = scmp.ne.s32.totalorder %s879_s19, %s875_s18 }
   0xa   : > { %s1132_s26 = smov (%p36_p0, %s34_s26), 0  ;;  %p154_p5 = scmp.eq.s32.totalorder %s672_s25, 1 }
   0xb   : > { %p971_p4 = por %p148_p2, %p147_p1  ;;  %s132_s29 = ssub.s32 %s891_s22, %s1132_s26 }
   0xc   : > { %p676_p6 = scmp.ge.s32.totalorder %s895_s23, 1  ;;  %p135_p7 = scmp.eq.s32.totalorder %s132_s29, 0 }
   0xd   : > { %p978_p8 = por %p154_p5, %p153_p3  ;;  %p223_p9 = scmp.lt.s32.totalorder %s895_s23, 3 }
   0xe   : > { %s984_s6 = scalar_select %p135_p7, %s883_s20, %s137_s27  }
   0xf   : > { %p224_p10 = pnand %p676_p6, %p223_p9 }
  0x10   : > { %v280_v0 = vld [vmem:[%s1120_s2] sm:$0xff] (!%p224_p10)  ;;  %p261_p11 = scmp.lt.s32.totalorder (!%p224_p10), %s887_s21, 1  ;;  %vm286_vm0 = vcmask (!%p224_p10), 64512   ;;  %v282_v3 = vlaneseq (!%p224_p10)  ;;  %vm368_vm1 = vcmask (!%p224_p10), 261120   ;;  %vm416_vm2 = vcmask (!%p224_p10), 130048   ;;  %s1006_s24 = sand.u32 (!%p224_p10), 1, %s879_s19  }
  0x11   : > { %227 = sbr.rel (%p224_p10) target bundleno = 805 (0x325), region = 36  ;;  %703 = vmatprep.subr.mxu0 (!%p224_p10), %v280_v0  ;;  %v281_v6 = vld [vmem:[%s1121_s3] sm:$0x7] (!%p224_p10)  ;;  %s677_s25 = sshll.u32 (!%p224_p10), %s1006_s24, 4  ;;  %v413_v48 = vld [vmem:[%s1119_s1 + $0x8] sm:$0xff] (!%p224_p10) }
  0x12   : > { %704 = vmatpush3.msra.mxu0 (!%p224_p10), %v280_v0  ;;  %v283_v4 = vshrl.u32 (!%p224_p10), %v282_v3, 7  ;;  %v412_v24 = vld [vmem:[%s1119_s1] sm:$0xff] (!%p224_p10)  ;;  %s260_s27 = scalar_lea.vmem (!%p224_p10), [#allocation5], %s677_s25  ;;  %s897_s15 = smov (!%p224_p10), [#allocation5]  }
  0x13   : > { %712 = vmatprep.mubr.msk.f32.mxu1 (!%p224_p10), %vm416_vm2, %v412_v24  ;;  %s546_s8 = sshll.u32 (!%p224_p10), %s260_s27, 4  ;;  %s789_s16 = sshll.u32 (!%p224_p10), %s897_s15, 4  ;;  %s1019_s8 = int_to_ptr.vmem [resolvable:$true] %s546_s8  ;;  %s790_s16 = int_to_ptr.vmem [resolvable:$false] %s789_s16 }
  0x14   : > { %v284_v5 = vsub.s32 (!%p224_p10), 0, %v283_v4  ;;  %v398_v31 = vsub.s32 (!%p224_p10), 1, %v283_v4  ;;  %v404_v32 = vsub.s32 (!%p224_p10), 2, %v283_v4  ;;  %s785_s14 = scalar_lea.vmem (!%p224_p10), %s1019_s8, 256  ;;  %s791_s17 = scalar_lea.vmem (!%p224_p10), %s790_s16, 512 }
  0x15   : > { %p786_p12 = scmp.ne.s32.totalorder (!%p224_p10), %s1019_s8, %s785_s14  ;;  %p792_p1 = scmp.lt.s32.totalorder (!%p224_p10), %s1019_s8, %s790_s16 }
  0x16   : > { %v285_v7 = vrot.slane (!%p224_p10), %v281_v6, %v284_v5  ;;  %v399_v33 = vrot.slane (!%p224_p10), %v281_v6, %v398_v31  ;;  %v405_v35 = vrot.slane (!%p224_p10), %v281_v6, %v404_v32  ;;  %p793_p2 = scmp.lt.s32.totalorder (!%p224_p10), %s791_s17, %s785_s14 }
  0x17   : > { %p787_p13 = pnand (!%p224_p10), %p786_p12, %p971_p4 }
  0x18   : > { %s262_s9 = scalar_select %p261_p11, %s887_s21, 1 }
  0x19   : > { %p788_p0 = pneg %p787_p13  ;;  %p794_p3 = por %p793_p2, %p792_p1 }
  0x1a   : > { %s693_s10 = sshll.u32 %s262_s9, 4  ;;  %s694_s9 = sshll.u32 %s887_s21, 8 }
  0x1b   : > { %s265_s13 = scalar_lea.vmem %s1118_s0, %s693_s10  ;;  %s1027_s12 = scalar_lea.hbm %s1123_s5, %s694_s9 }
  0x1c   : > { %v278_v1 = vld [vmem:[%s265_s13] sm:$0xff]  ;;  %v279_v2 = vld [vmem:[%s265_s13 + $0x8] sm:$0xff]  ;;  %s513_s13 = scalar_lea.sflag [#allocation6], %s1006_s24  ;;  %p795_p5 = pnand %p794_p3, %p788_p0 }
  0x1d   : > { %705 = vmatprep.mubr.msk.f32.mxu0 %vm286_vm0, %v278_v1 }
  0x1e   : > { %706 = vmatmul.mubr.msk.f32.vlgmr.msra.gmra.mrb[0].mxu0 %vm286_vm0, %v279_v2 }
  0xf1   : > { %v707_v8 = vpop.f32.mrb[0].mxu0 }
  0xf2   : > { %v359_v9 = vpop.f32.mrb[1].mxu0  ;;  %v365_v11 = vadd.f32 %v707_v8, %v285_v7 }
  0xf3   : > { %v360_v10 = vadd.f32 %v359_v9, %v285_v7 }
  0xf4   : > { %v372_v13 = vsel %vm368_vm1, %v365_v11, 0.0 }
  0xf5   : > { %v369_v12 = vsel %vm368_vm1, %v360_v10, 0.0 }
  0xf6   : > { %370 = vadd.xlane.f32.xlu0 %v369_v12 }
  0xfa   : > { %373 = vadd.xlane.f32.xlu0 %v372_v13 }
 0x183   : > { %v371_v14 = vpop.xlane.xlu0 %370 }
 0x184   : > { %v376_v15 = vmul.f32 0.03125, %v371_v14 }
 0x186   : > { %v378_v16 = vsub.f32 %v360_v10, %v376_v15 }
 0x187   : > { %v374_v17 = vpop.xlane.xlu0 %373 }
 0x188   : > { %v377_v18 = vmul.f32 0.03125, %v374_v17  ;;  %v380_v19 = vmul.f32 %v378_v16, %v378_v16 }
 0x18a   : > { %v379_v20 = vsub.f32 %v365_v11, %v377_v18  ;;  %v382_v21 = vsel %vm368_vm1, %v380_v19, 0.0 }
 0x18b   : > { %383 = vadd.xlane.f32.xlu1 %v382_v21 }
 0x18c   : > { %v381_v22 = vmul.f32 %v379_v20, %v379_v20 }
 0x18e   : > { %v385_v23 = vsel %vm368_vm1, %v381_v22, 0.0 }
 0x18f   : > { %386 = vadd.xlane.f32.xlu1 %v385_v23 }
 0x218   : > { %v384_v25 = vpop.xlane.xlu1 %383 }
 0x219   : > { %v388_v26 = vmul.f32 0.03125, %v384_v25 }
 0x21b   : > { %v390_v27 = vadd.f32 1e-05, %v388_v26 }
 0x21c   : > { %v387_v28 = vpop.xlane.xlu1 %386 }
 0x21d   : > { %781 = vrsqrt.f32 %v390_v27  ;;  %v389_v29 = vmul.f32 0.03125, %v387_v28 }
 0x21f   : > { %v391_v30 = vadd.f32 1e-05, %v389_v29 }
 0x221   : > { %783 = vrsqrt.f32 %v391_v30 }
 0x227   : > { %v782_v34 = vpop.eup %781 }
 0x228   : > { %v394_v36 = vmul.f32 %v782_v34, %v378_v16 }
 0x22a   : > { %v400_v37 = vmul.f32 %v399_v33, %v394_v36 }
 0x22b   : > { %v784_v38 = vpop.eup %783 }
 0x22c   : > { %v406_v39 = vadd.f32 %v405_v35, %v400_v37  ;;  %v395_v40 = vmul.f32 %v784_v38, %v379_v20 }
 0x22e   : > { %v408_v41 = vmax.f32 %v406_v39, 0.0  ;;  %v401_v42 = vmul.f32 %v399_v33, %v395_v40 }
 0x230   : > { %410 = vst.msk [vmem:[#allocation2] sm:$0xff] %vm368_vm1, %v408_v41  ;;  %v407_v43 = vadd.f32 %v405_v35, %v401_v42 }
 0x232   : > { %v409_v44 = vmax.f32 %v407_v43, 0.0 }
 0x234   : > { %411 = vst.msk [vmem:[#allocation2 + $0x8] sm:$0xff] %vm368_vm1, %v409_v44 }
 0x237   : > { %v414_v45 = vld [vmem:[#allocation2] sm:$0xff] }
 0x238   : > { %505 = vst.msk [vmem:[%s260_s27] sm:$0xff] %vm368_vm1, %v414_v45 }
 0x23b   : > { %v415_v46 = vld [vmem:[#allocation2 + $0x8] sm:$0xff] }
 0x23c   : > { %v715_v47 = vpack.c.bf16 %v415_v46, %v414_v45  ;;  %506 = vst.msk [vmem:[%s260_s27 + $0x8] sm:$0xff] %vm368_vm1, %v415_v46 }
 0x23e   : > { %716 = vmatprep.subr.bf16.mxu1 %v715_v47 }
 0x23f   : > { %718 = vmatpush3.bf16.msra.mxu1 %v715_v47 }
 0x242   : > { %713 = vmatmul.mubr.msk.f32.vlgmr.msra.gmra.mrb[0].mxu1 %vm416_vm2, %v413_v48 }
 0x243   : > { %798 = shalt.err (!%p795_p5)
}
 0x244   : > { %s799_s27 = scalar_lea.hbm %s1027_s12, 256  ;;  %s803_s10 = scalar_lea.hbm %s1123_s5, 512 }
 0x245   : > { %p800_p6 = scmp.ne.s32.totalorder %s1027_s12, %s799_s27  ;;  %p804_p10 = scmp.lt.u32.totalorder %s1027_s12, %s1123_s5 }
 0x246   : > { %p805_p11 = scmp.lt.u32.totalorder %s803_s10, %s799_s27  ;;  %p807_p13 = scmp.lt.u32.totalorder %s799_s27, %s1027_s12 }
 0x247   : > { %p801_p7 = pnand %p800_p6, %p971_p4 }
 0x248   : > { %p806_p12 = por %p805_p11, %p804_p10 }
 0x249   : > { %p802_p9 = pneg %p801_p7 }
 0x24a   : > { %p808_p0 = por %p807_p13, %p806_p12 }
 0x24c   : > { %p809_p1 = pnand %p808_p0, %p802_p9 }
 0x24e   : > { %812 = shalt.err (!%p809_p1)
}
 0x24f   : > { %s898_s14 = smov 128   ;;  %s899_s16 = smov 8  }
 0x250   : > { %720 = dma.vmem_to_hbm [thread:$0]  (%p971_p4), %s1019_s8, 256, %s1027_s12, %s513_s13, %s898_s14, %s898_s14, %s899_s16  }
 0x251   : > { %s253_s17 = scalar_lea.vmem [#allocation3], %s677_s25  ;;  %s1065_s10 = scalar_lea.hbm %s1122_s4, %s694_s9 }
 0x252   : > { %s528_s27 = sshll.u32 %s253_s17, 4  ;;  %s508_s8 = scalar_lea.sflag [#allocation4], %s1006_s24  ;;  %s1058_s27 = int_to_ptr.vmem [resolvable:$true] %s528_s27 }
 0x253   : > { %s813_s25 = scalar_lea.vmem %s1058_s27, 256  ;;  %s900_s21 = smov [#allocation3]  }
 0x254   : > { %p814_p2 = scmp.ne.s32.totalorder %s1058_s27, %s813_s25  ;;  %s817_s12 = sshll.u32 %s900_s21, 4  ;;  %s818_s12 = int_to_ptr.vmem [resolvable:$false] %s817_s12 }
 0x255   : > { %s819_s13 = scalar_lea.vmem %s818_s12, 512  ;;  %p820_p6 = scmp.lt.s32.totalorder %s1058_s27, %s818_s12 }
 0x256   : > { %p815_p3 = pnand %p814_p2, %p971_p4  ;;  %p821_p7 = scmp.lt.s32.totalorder %s819_s13, %s813_s25 }
 0x258   : > { %p816_p5 = pneg %p815_p3  ;;  %p822_p9 = por %p821_p7, %p820_p6 }
 0x25a   : > { %p823_p10 = pnand %p822_p9, %p816_p5 }
 0x315   : > { %v714_v49 = vpop.f32.mrb[0].mxu1 }
 0x316   : > { %500 = vst.msk [vmem:[%s253_s17 + $0x8] sm:$0xff] %vm368_vm1, %v714_v49  ;;  %v489_v50 = vpop.f32.mrb[1].mxu1 }
 0x317   : > { %499 = vst.msk [vmem:[%s253_s17] sm:$0xff] %vm368_vm1, %v489_v50 }
 0x318   : > { %826 = shalt.err (!%p823_p10)
}
 0x319   : > { %s827_s9 = scalar_lea.hbm %s1065_s10, 256  ;;  %s831_s17 = scalar_lea.hbm %s1122_s4, 512 }
 0x31a   : > { %p828_p11 = scmp.ne.s32.totalorder %s1065_s10, %s827_s9  ;;  %p832_p0 = scmp.lt.u32.totalorder %s1065_s10, %s1122_s4 }
 0x31b   : > { %p833_p1 = scmp.lt.u32.totalorder %s831_s17, %s827_s9  ;;  %p835_p3 = scmp.lt.u32.totalorder %s827_s9, %s1065_s10 }
 0x31c   : > { %p829_p12 = pnand %p828_p11, %p971_p4 }
 0x31d   : > { %p834_p2 = por %p833_p1, %p832_p0 }
 0x31e   : > { %p830_p13 = pneg %p829_p12 }
 0x31f   : > { %p836_p5 = por %p835_p3, %p834_p2 }
 0x321   : > { %p837_p6 = pnand %p836_p5, %p830_p13 }
 0x323   : > { %840 = shalt.err (!%p837_p6)
}
 0x324   : > { %719 = dma.vmem_to_hbm [thread:$0]  (%p971_p4), %s1058_s27, 256, %s1065_s10, %s508_s8, %s898_s14, %s898_s14, %s899_s16  }
 0x325 PF: > { %p730_p7 = scmp.ge.s32.totalorder %s895_s23, 2  ;;  %s561_s25 = sand.u32 1, %s875_s18  }
 0x326   : > { %s562_s21 = scalar_lea.sflag [#allocation4], %s561_s25 }
 0x327   : > { %p724_p9 = pnand %p730_p7, %p978_p8 }
 0x329   : > { %866 = dma.done.wait (!%p724_p9), %s562_s21, 256  }
 0x32a   : > { %868 = vsyncadd (!%p724_p9), %s562_s21, 4294967040  ;;  %s571_s28 = scalar_lea.sflag [#allocation6], %s561_s25 }
 0x32b   : > { %870 = dma.done.wait (!%p724_p9), %s571_s28, 256  }
 0x32c   : > { %872 = vsyncadd (!%p724_p9), %s571_s28, 4294967040  ;;  %s22_s23 = sadd.s32 1, %s895_s23   ;;  %s1126_s18 = smov %s879_s19 }
 0x32d   : > { %p19_p10 = scmp.ge.s32.totalorder %s22_s23, 4   ;;  %s1127_s19 = smov %s883_s20 }
 0x32e   : > { %s1128_s20 = smov %s984_s6  ;;  %s1129_s21 = smov %s891_s22 }
 0x32f   : > { %s1130_s22 = smov %s1132_s26  ;;  %21 = sbr.rel (!%p19_p10) target bundleno = 6 (0x6), region = 96 }
 0x336   :  { %576 = vsyncpa [#allocation4], 1 }
 0x337   :  { %578 = vsyncpa [#allocation4 + $0x1], 1 }
 0x338   :  { %579 = vsyncpa [#allocation6], 1 }
 0x339   :  { %581 = vsyncpa [#allocation6 + $0x1], 1 }

</bundles_post_ra>
